<compile_context>
chip_gen: v5e
topology: v5e:2x2
jax: 0.10.0
libtpu: 0.0.40
codegen_flags: <defaults>
</compile_context>

<pallas_src>
import functools

import numpy as np
import jax
import jax.numpy as jnp
from jax.experimental import pallas as pl
from jax.experimental.pallas import tpu as pltpu


# 1D taps of the [1,3,3,1] blur: outer/sum * factor**2 is separable -> [1,3,3,1]/4
_K1D = (0.25, 0.75, 0.75, 0.25)


# ----------------------------------------------------------------------------
# Constant blur matrices
# ----------------------------------------------------------------------------
def _build_vmat(TH, dtype):
    """(TH, TM+2): vertical taps + even/odd output-row interleave.

    With win = vertically 1-padded skip rows [m0, m0+TM+2):
      out_row[2m]   = k0*win[m]   + k2*win[m+1]
      out_row[2m+1] = k1*win[m+1] + k3*win[m+2]
    """
    k0, k1, k2, k3 = _K1D
    TM = TH // 2
    v = np.zeros((TH, TM + 2), np.float32)
    for m in range(TM):
        v[2 * m, m] = k0
        v[2 * m, m + 1] = k2
        v[2 * m + 1, m + 1] = k1
        v[2 * m + 1, m + 2] = k3
    return jnp.asarray(v, dtype)


def _build_hmat(Ws, dtype):
    """(Ws, 2*Ws): horizontal taps + even/odd output-column interleave.

    Zero border columns are folded in (no horizontal padding of skip needed):
      out_col[2n]   = k0*s[n-1] + k2*s[n]
      out_col[2n+1] = k1*s[n]   + k3*s[n+1]
    """
    k0, k1, k2, k3 = _K1D
    h = np.zeros((Ws, 2 * Ws), np.float32)
    for n in range(Ws):
        if n > 0:
            h[n - 1, 2 * n] += k0
        h[n, 2 * n] += k2
        h[n, 2 * n + 1] += k1
        if n + 1 < Ws:
            h[n + 1, 2 * n + 1] += k3
    return jnp.asarray(h, dtype)


# ----------------------------------------------------------------------------
# Kernels
# ----------------------------------------------------------------------------
def _mod_conv1x1_kernel(wb_ref, x_ref, o_ref, *, O, C):
    # wb_ref: SMEM (N, O*C + O), packed [modulated weight | bias], f32 scalars
    # x_ref:  (1, C, TH, W)   o_ref: (1, O, TH, W)
    n = pl.program_id(0)
    xs = [x_ref[0, c].astype(jnp.float32) for c in range(C)]
    for o in range(O):
        acc = wb_ref[n, O * C + o] + wb_ref[n, o * C] * xs[0]
        for c in range(1, C):
            acc = acc + wb_ref[n, o * C + c] * xs[c]
        o_ref[0, o] = acc.astype(o_ref.dtype)


def _fused_to_rgb_kernel(wb_ref, vmat_ref, hmat_ref, x_ref, skip_ref, o_ref,
                         *, O, C, TM, blur_dtype):
    # wb_ref:   SMEM (N, O*C + O)   packed [modulated weight | bias], f32 scalars
    # vmat_ref: (TH, TM+2)          vertical taps + row interleave (resident)
    # hmat_ref: (Ws, W)             horizontal taps + col interleave (resident)
    # x_ref:    (1, C, TH, W)       row tile of the conv input
    # skip_ref: (1, O, Hs+2, Ws)    vertically 1-padded skip plane (resident per n)
    # o_ref:    (1, O, TH, W)       row tile of the NCHW output
    n = pl.program_id(0)
    TH = 2 * TM
    m0 = pl.multiple_of(pl.program_id(1) * TM, TM)   # TM % 8 == 0 for tiled grids

    # ---- blur-upsample of skip: small per-channel V matmuls, then ONE big
    # hmat matmul over all channels (single MXU weight latch per tile). ----
    V = vmat_ref[...]
    parts = [
        jnp.dot(V, skip_ref[0, c, pl.ds(m0, TM + 2), :],
                preferred_element_type=jnp.float32)               # (TH, Ws)
        for c in range(O)
    ]
    lhs = jnp.concatenate(parts, axis=0).astype(blur_dtype)       # (O*TH, Ws), aligned
    blur = jnp.dot(lhs, hmat_ref[...],
                   preferred_element_type=jnp.float32)            # (O*TH, W)

    # ---- modulated 1x1 conv on the VPU (wmod/bias scalars from SMEM), fused
    # with the blur; one full (TH, W) store per channel, accumulation in f32. ----
    xs = [x_ref[0, c].astype(jnp.float32) for c in range(C)]
    for o in range(O):
        acc = blur[o * TH:(o + 1) * TH, :] + wb_ref[n, O * C + o]
        for c in range(C):
            acc = acc + wb_ref[n, o * C + c] * xs[c]
        o_ref[0, o] = acc.astype(o_ref.dtype)


# ----------------------------------------------------------------------------
# VMEM accounting / tile selection
# ----------------------------------------------------------------------------
def _vmem_capacity_bytes():
    try:
        cap = getattr(pltpu.get_tpu_info(), "vmem_capacity_bytes", None)
        if cap:
            return int(cap)
    except Exception:
        pass
    return 64 * 1024 * 1024     # v7x per-core (smallest of v5e / v6e / v7x)


def _row_tile_candidates(H, with_skip):
    cands = []
    for th in range(H, 0, -1):
        if H % th:
            continue
        if with_skip and th % 2:
            continue                                  # TM = th/2 must be integral
        if th != H and th % (16 if with_skip else 8):
            continue                                  # sublane-aligned tiles
        cands.append(th)
    return cands                                      # descending


def _fused_vmem_bytes(TH, C, O, W, Hs, Ws, sb):
    TM = TH // 2
    b = 2 * C * TH * W * sb            # x block (double-buffered)
    b += 2 * O * TH * W * 4            # out block (double-buffered, f32)
    b += 2 * O * (Hs + 2) * Ws * sb    # resident skip plane (2 buffers by default)
    b += 2 * Ws * W * sb               # hmat
    b += 2 * TH * (TM + 2) * sb        # vmat
    b += O * TH * Ws * (4 + sb)        # V@win parts + stream-dtype cast
    b += O * TH * W * 4                # hmat matmul result
    b += 4 * TH * W * 4                # conv accumulators / channel upcasts slack
    return b


def _conv_vmem_bytes(TH, C, O, W, sb):
    return 2 * C * TH * W * sb + 2 * O * TH * W * 4 + 4 * TH * W * 4


# ----------------------------------------------------------------------------
# Wrapper
# ----------------------------------------------------------------------------
def modulated_conv2d(x, style, skip=None, params=None, *, demodulate=False,
                     style_bias=0.0, eps=1e-8, row_tile=None,
                     stream_dtype=jnp.bfloat16):
    """ModulatedConv2d (kernel_size=1, stride 1) + optional fused skip upsample-add."""
    N, C, H, W = x.shape
    S = style.shape[1]
    O = params["w_conv"].shape[1]
    out_dtype = x.dtype

    # --- tiny per-sample weight math in plain XLA (N*O*C floats, f32) ---------
    # EqualLinearActModule: equalized-lr linear (gain=1, lr_mul=1, fan_in=S) + bias.
    s = style.astype(jnp.float32) @ (params["w_style"].T.astype(jnp.float32)
                                     * (1.0 / np.sqrt(S))) + params["b_style"]   # (N, C)
    # ModulatedConv2d weight with equalized-lr scale 1/sqrt(C*k*k), k=1.
    wc = params["w_conv"][0, :, :, 0, 0].astype(jnp.float32) * (1.0 / np.sqrt(C))  # (O, C)
    wmod = wc[None, :, :] * (s[:, None, :] + style_bias)                            # (N, O, C)
    if demodulate:
        d = jax.lax.rsqrt(jnp.sum(wmod * wmod, axis=2, keepdims=True) + eps)
        wmod = wmod * d
    bias = params["bias"].reshape(O).astype(jnp.float32)
    # Packed scalar-prefetch table per sample: [wmod (O*C) | bias (O)], f32 in SMEM.
    wb = jnp.concatenate([wmod.reshape(N, O * C),
                          jnp.broadcast_to(bias[None, :], (N, O))], axis=1)
    # TODO(synk): fp16 weight/style inf-norm pre-normalization branch not implemented.

    sb = jnp.dtype(stream_dtype).itemsize
    vmem_cap = _vmem_capacity_bytes()
    vmem_limit = max(32 * 1024 * 1024, int(0.75 * vmem_cap))   # v7x ~48MiB, v5e/v6e ~96MiB
    budget = int(0.80 * vmem_limit)

    x_s = x.astype(stream_dtype)

    cparams = pltpu.CompilerParams(
        # Both grid axes are truly parallel; megacore (v7x) may shard either.
        dimension_semantics=("parallel", "parallel"),
        vmem_limit_bytes=vmem_limit,
    )

    if skip is None:
        if row_tile is not None:
            TH = int(row_tile)
            assert H % TH == 0 and (TH % 8 == 0 or TH == H)
        else:
            cands = _row_tile_candidates(H, with_skip=False)
            fits = [t for t in cands if _conv_vmem_bytes(t, C, O, W, sb) <= budget]
            TH = fits[0] if fits else cands[-1]
        T = H // TH
        kern = functools.partial(_mod_conv1x1_kernel, O=O, C=C)
        grid_spec = pltpu.PrefetchScalarGridSpec(
            num_scalar_prefetch=1, grid=(N, T),
            in_specs=[pl.BlockSpec((1, C, TH, W), lambda n, t, s_: (n, 0, t, 0))],
            out_specs=pl.BlockSpec((1, O, TH, W), lambda n, t, s_: (n, 0, t, 0)),
        )
        return pl.pallas_call(
            kern, out_shape=jax.ShapeDtypeStruct((N, O, H, W), out_dtype),
            grid_spec=grid_spec, compiler_params=cparams,
        )(wb, x_s)
        # TODO(synk): for non-to_rgb 1x1 convs (large O*C) the conv should be an MXU
        # matmul with wmod stationary in an NHWC-style layout instead of this VPU path.

    Ns, Cs, Hs, Ws = skip.shape
    assert (Ns, Cs) == (N, O) and (2 * Hs, 2 * Ws) == (H, W)

    if row_tile is not None:
        TH = int(row_tile)
        assert H % TH == 0 and TH % 2 == 0 and (TH % 8 == 0 or TH == H)
    else:
        cands = _row_tile_candidates(H, with_skip=True)
        fits = [t for t in cands
                if _fused_vmem_bytes(t, C, O, W, Hs, Ws, sb) <= budget]
        TH = fits[0] if fits else cands[-1]
    T = H // TH
    TM = TH // 2

    vmat = _build_vmat(TH, stream_dtype)                          # (TH, TM+2)
    hmat = _build_hmat(Ws, stream_dtype)                          # (Ws, W)
    # 1-px vertical zero border only (horizontal border folded into hmat).
    # TODO(synk): fold the vertical border into the first/last row tile in-kernel
    # and drop this (small) extra pass over the 3xHs xWs skip tensor.
    skip_pad = jnp.pad(skip, ((0, 0), (0, 0), (1, 1), (0, 0))).astype(stream_dtype)

    kern = functools.partial(_fused_to_rgb_kernel, O=O, C=C, TM=TM,
                             blur_dtype=stream_dtype)
    grid_spec = pltpu.PrefetchScalarGridSpec(
        num_scalar_prefetch=1, grid=(N, T),
        in_specs=[
            pl.BlockSpec((TH, TM + 2), lambda n, t, s_: (0, 0)),             # vmat
            pl.BlockSpec((Ws, W), lambda n, t, s_: (0, 0)),                  # hmat
            pl.BlockSpec((1, C, TH, W), lambda n, t, s_: (n, 0, t, 0)),      # x tile
            pl.BlockSpec((1, O, Hs + 2, Ws), lambda n, t, s_: (n, 0, 0, 0)), # skip plane
        ],
        out_specs=pl.BlockSpec((1, O, TH, W), lambda n, t, s_: (n, 0, t, 0)),
    )
    return pl.pallas_call(
        kern, out_shape=jax.ShapeDtypeStruct((N, O, H, W), out_dtype),
        grid_spec=grid_spec, compiler_params=cparams,
    )(wb, vmat, hmat, x_s, skip_pad)
    # TODO(synk): kernel_size>1 / upsample(conv_transpose) / downsample branches of
    # ModulatedConv2d are not implemented; only the 1x1 to_rgb configuration is.


# ----------------------------------------------------------------------------
# Pure-JAX reference (self-check only)
# ----------------------------------------------------------------------------
def _reference(x, style, skip, params, demodulate=False, eps=1e-8):
    hi = jax.lax.Precision.HIGHEST
    N, C, H, W = x.shape
    S = style.shape[1]
    s = style @ (params["w_style"].T / np.sqrt(S)) + params["b_style"]
    w = (params["w_conv"][0, :, :, 0, 0] / np.sqrt(C))[None] * s[:, None, :]
    if demodulate:
        d = jax.lax.rsqrt(jnp.sum(w * w, axis=2, keepdims=True) + eps)
        w = w * d
    out = jnp.einsum("noc,nchw->nohw", w, x, precision=hi) + params["bias"]
    if skip is not None:
        k = jnp.outer(jnp.array([1.0, 3.0, 3.0, 1.0]), jnp.array([1.0, 3.0, 3.0, 1.0]))
        k = k / k.sum() * 4.0
        Ns, Cs, Hs, Ws = skip.shape
        up = jax.lax.conv_general_dilated(
            skip.reshape(Ns * Cs, 1, Hs, Ws),
            jnp.flip(k)[None, None],
            window_strides=(1, 1),
            padding=((2, 2), (2, 2)),
            lhs_dilation=(2, 2),
            dimension_numbers=("NCHW", "OIHW", "NCHW"),
            precision=hi,
        ).reshape(Ns, Cs, 2 * Hs, 2 * Ws)
        out = out + up
    return out


if __name__ == "__main__":
    N, C, S, O = 2, 4, 8, 3   # in_channels=4, style_channels=8, out_channels=3

    key = jax.random.PRNGKey(0)
    kx, ks, kk, kws, kwc, kb, kx2, kk2 = jax.random.split(key, 8)

    H = W = 16
    x = jax.random.normal(kx, (N, C, H, W), jnp.float32)
    style = jax.random.normal(ks, (N, S), jnp.float32)
    skip = jax.random.normal(kk, (N, O, H // 2, W // 2), jnp.float32)

    params = dict(
        w_style=jax.random.normal(kws, (C, S), jnp.float32),      # (out=C, in=S)
        b_style=jnp.ones((C,), jnp.float32),                      # bias_init=1.0
        w_conv=jax.random.normal(kwc, (1, O, C, 1, 1), jnp.float32),
        bias=0.1 * jax.random.normal(kb, (1, O, 1, 1), jnp.float32),
    )

    f32 = jnp.float32
    f_fused_f32 = jax.jit(lambda a, b, c, p: modulated_conv2d(a, b, c, p, stream_dtype=f32))
    f_fused_bf16 = jax.jit(lambda a, b, c, p: modulated_conv2d(a, b, c, p))
    f_noskip = jax.jit(lambda a, b, p: modulated_conv2d(a, b, None, p, stream_dtype=f32))
    f_demod = jax.jit(lambda a, b, c, p: modulated_conv2d(a, b, c, p, demodulate=True,
                                                          stream_dtype=f32))
    f_tiled = jax.jit(lambda a, b, c, p: modulated_conv2d(a, b, c, p, row_tile=16,
                                                          stream_dtype=f32))

    # fused conv + blur-upsample + add, f32 streaming (single row tile)
    out = jax.block_until_ready(f_fused_f32(x, style, skip, params))
    ref = jax.block_until_ready(_reference(x, style, skip, params))
    np.testing.assert_allclose(np.asarray(out), np.asarray(ref), rtol=1e-2, atol=5e-2)

    # same, default bf16 streaming of x / skip (looser tolerance)
    out_bf = jax.block_until_ready(f_fused_bf16(x, style, skip, params))
    np.testing.assert_allclose(np.asarray(out_bf), np.asarray(ref), rtol=5e-2, atol=1e-1)

    # conv-only path (no skip), pure-VPU f32 math -> tight tolerance
    out_ns = jax.block_until_ready(f_noskip(x, style, params))
    ref_ns = jax.block_until_ready(_reference(x, style, None, params))
    np.testing.assert_allclose(np.asarray(out_ns), np.asarray(ref_ns), rtol=1e-4, atol=1e-4)

    # demodulate=True fused path
    out_d = jax.block_until_ready(f_demod(x, style, skip, params))
    ref_d = jax.block_until_ready(_reference(x, style, skip, params, demodulate=True))
    np.testing.assert_allclose(np.asarray(out_d), np.asarray(ref_d), rtol=1e-2, atol=5e-2)

    # larger spatial size with an explicit 16-row tile (T=2: exercises the tiled
    # grid, the dynamic sublane-aligned skip window, and output revisiting-free stores)
    H2 = W2 = 32
    x2 = jax.random.normal(kx2, (N, C, H2, W2), jnp.float32)
    skip2 = jax.random.normal(kk2, (N, O, H2 // 2, W2 // 2), jnp.float32)
    out_t = jax.block_until_ready(f_tiled(x2, style, skip2, params))
    ref_t = jax.block_until_ready(_reference(x2, style, skip2, params))
    np.testing.assert_allclose(np.asarray(out_t), np.asarray(ref_t), rtol=1e-2, atol=5e-2)

    print("KERNEL_OK")
</pallas_src>

<mosaic_0001>
module attributes {stable_mosaic.version = 11 : i64} {
  func.func @_fused_to_rgb_kernel(%arg0: i32, %arg1: i32, %arg2: memref<2x15xf32, #tpu.memory_space<smem>>, %arg3: memref<16x10xf32, #tpu.memory_space<vmem>>, %arg4: memref<8x16xf32, #tpu.memory_space<vmem>>, %arg5: memref<1x4x16x16xf32, #tpu.memory_space<vmem>>, %arg6: memref<1x3x10x8xf32, #tpu.memory_space<vmem>>, %arg7: memref<1x3x16x16xf32, #tpu.memory_space<vmem>>) attributes {dimension_semantics = [#tpu.dimension_semantics<parallel>, #tpu.dimension_semantics<parallel>], iteration_bounds = array<i64: 2, 1>, scalar_prefetch = 1 : i64, scratch_operands = 0 : i64, tpu.core_type = #tpu.core_type<tc>, window_params = [{pipeline_mode = #tpu.pipeline_mode<synchronous>, transform_indices = @transform_0, window_bounds = array<i64: 16, 10>}, {pipeline_mode = #tpu.pipeline_mode<synchronous>, transform_indices = @transform_1, window_bounds = array<i64: 8, 16>}, {transform_indices = @transform_2, window_bounds = array<i64: 1, 4, 16, 16>}, {transform_indices = @transform_3, window_bounds = array<i64: 1, 3, 10, 8>}, {transform_indices = @transform_4, window_bounds = array<i64: 1, 3, 16, 16>}]} {
    %c8_i32 = arith.constant 8 : i32
    %0 = arith.muli %arg1, %c8_i32 : i32
    %1 = tpu.assume_multiple %0, 8 : i32
    %c0 = arith.constant 0 : index
    %c0_0 = arith.constant 0 : index
    %2 = vector.load %arg3[%c0, %c0_0] : memref<16x10xf32, #tpu.memory_space<vmem>>, vector<16x10xf32>
    %c0_1 = arith.constant 0 : index
    %c0_2 = arith.constant 0 : index
    %3 = arith.index_cast %1 : i32 to index
    %c0_3 = arith.constant 0 : index
    %4 = vector.load %arg6[%c0_1, %c0_2, %3, %c0_3] : memref<1x3x10x8xf32, #tpu.memory_space<vmem>>, vector<1x1x10x8xf32>
    %5 = vector.shape_cast %4 : vector<1x1x10x8xf32> to vector<10x8xf32>
    %cst = arith.constant dense<0.000000e+00> : vector<16x8xf32>
    %6 = tpu.matmul %2, %5, %cst {dimension_numbers = #tpu.dot_dimension_numbers<[1], [0], [0], [1], [0, 0, 1, 1], [], []>} : vector<16x10xf32>, vector<10x8xf32>, vector<16x8xf32> -> vector<16x8xf32>
    %c0_4 = arith.constant 0 : index
    %c1 = arith.constant 1 : index
    %7 = arith.index_cast %1 : i32 to index
    %c0_5 = arith.constant 0 : index
    %8 = vector.load %arg6[%c0_4, %c1, %7, %c0_5] : memref<1x3x10x8xf32, #tpu.memory_space<vmem>>, vector<1x1x10x8xf32>
    %9 = vector.shape_cast %8 : vector<1x1x10x8xf32> to vector<10x8xf32>
    %cst_6 = arith.constant dense<0.000000e+00> : vector<16x8xf32>
    %10 = tpu.matmul %2, %9, %cst_6 {dimension_numbers = #tpu.dot_dimension_numbers<[1], [0], [0], [1], [0, 0, 1, 1], [], []>} : vector<16x10xf32>, vector<10x8xf32>, vector<16x8xf32> -> vector<16x8xf32>
    %c0_7 = arith.constant 0 : index
    %c2 = arith.constant 2 : index
    %11 = arith.index_cast %1 : i32 to index
    %c0_8 = arith.constant 0 : index
    %12 = vector.load %arg6[%c0_7, %c2, %11, %c0_8] : memref<1x3x10x8xf32, #tpu.memory_space<vmem>>, vector<1x1x10x8xf32>
    %13 = vector.shape_cast %12 : vector<1x1x10x8xf32> to vector<10x8xf32>
    %cst_9 = arith.constant dense<0.000000e+00> : vector<16x8xf32>
    %14 = tpu.matmul %2, %13, %cst_9 {dimension_numbers = #tpu.dot_dimension_numbers<[1], [0], [0], [1], [0, 0, 1, 1], [], []>} : vector<16x10xf32>, vector<10x8xf32>, vector<16x8xf32> -> vector<16x8xf32>
    %15 = tpu.concatenate %6, %10, %14 in 0 : vector<16x8xf32>, vector<16x8xf32>, vector<16x8xf32> -> vector<48x8xf32>
    %c0_10 = arith.constant 0 : index
    %c0_11 = arith.constant 0 : index
    %16 = vector.load %arg4[%c0_10, %c0_11] : memref<8x16xf32, #tpu.memory_space<vmem>>, vector<8x16xf32>
    %cst_12 = arith.constant dense<0.000000e+00> : vector<48x16xf32>
    %17 = tpu.matmul %15, %16, %cst_12 {dimension_numbers = #tpu.dot_dimension_numbers<[1], [0], [0], [1], [0, 0, 1, 1], [], []>} : vector<48x8xf32>, vector<8x16xf32>, vector<48x16xf32> -> vector<48x16xf32>
    %c0_13 = arith.constant 0 : index
    %c0_14 = arith.constant 0 : index
    %c0_15 = arith.constant 0 : index
    %c0_16 = arith.constant 0 : index
    %18 = vector.load %arg5[%c0_13, %c0_14, %c0_15, %c0_16] : memref<1x4x16x16xf32, #tpu.memory_space<vmem>>, vector<1x1x16x16xf32>
    %19 = vector.shape_cast %18 : vector<1x1x16x16xf32> to vector<16x16xf32>
    %c0_17 = arith.constant 0 : index
    %c1_18 = arith.constant 1 : index
    %c0_19 = arith.constant 0 : index
    %c0_20 = arith.constant 0 : index
    %20 = vector.load %arg5[%c0_17, %c1_18, %c0_19, %c0_20] : memref<1x4x16x16xf32, #tpu.memory_space<vmem>>, vector<1x1x16x16xf32>
    %21 = vector.shape_cast %20 : vector<1x1x16x16xf32> to vector<16x16xf32>
    %c0_21 = arith.constant 0 : index
    %c2_22 = arith.constant 2 : index
    %c0_23 = arith.constant 0 : index
    %c0_24 = arith.constant 0 : index
    %22 = vector.load %arg5[%c0_21, %c2_22, %c0_23, %c0_24] : memref<1x4x16x16xf32, #tpu.memory_space<vmem>>, vector<1x1x16x16xf32>
    %23 = vector.shape_cast %22 : vector<1x1x16x16xf32> to vector<16x16xf32>
    %c0_25 = arith.constant 0 : index
    %c3 = arith.constant 3 : index
    %c0_26 = arith.constant 0 : index
    %c0_27 = arith.constant 0 : index
    %24 = vector.load %arg5[%c0_25, %c3, %c0_26, %c0_27] : memref<1x4x16x16xf32, #tpu.memory_space<vmem>>, vector<1x1x16x16xf32>
    %25 = vector.shape_cast %24 : vector<1x1x16x16xf32> to vector<16x16xf32>
    %26 = vector.extract_strided_slice %17 {offsets = [0, 0], sizes = [16, 16], strides = [1, 1]} : vector<48x16xf32> to vector<16x16xf32>
    %27 = arith.index_cast %arg0 : i32 to index
    %c12 = arith.constant 12 : index
    %28 = memref.load %arg2[%27, %c12] : memref<2x15xf32, #tpu.memory_space<smem>>
    %29 = vector.broadcast %28 : f32 to vector<16x16xf32>
    %30 = arith.addf %26, %29 : vector<16x16xf32>
    %31 = arith.index_cast %arg0 : i32 to index
    %c0_28 = arith.constant 0 : index
    %32 = memref.load %arg2[%31, %c0_28] : memref<2x15xf32, #tpu.memory_space<smem>>
    %33 = vector.broadcast %32 : f32 to vector<16x16xf32>
    %34 = arith.mulf %33, %19 : vector<16x16xf32>
    %35 = arith.addf %30, %34 : vector<16x16xf32>
    %36 = arith.index_cast %arg0 : i32 to index
    %c1_29 = arith.constant 1 : index
    %37 = memref.load %arg2[%36, %c1_29] : memref<2x15xf32, #tpu.memory_space<smem>>
    %38 = vector.broadcast %37 : f32 to vector<16x16xf32>
    %39 = arith.mulf %38, %21 : vector<16x16xf32>
    %40 = arith.addf %35, %39 : vector<16x16xf32>
    %41 = arith.index_cast %arg0 : i32 to index
    %c2_30 = arith.constant 2 : index
    %42 = memref.load %arg2[%41, %c2_30] : memref<2x15xf32, #tpu.memory_space<smem>>
    %43 = vector.broadcast %42 : f32 to vector<16x16xf32>
    %44 = arith.mulf %43, %23 : vector<16x16xf32>
    %45 = arith.addf %40, %44 : vector<16x16xf32>
    %46 = arith.index_cast %arg0 : i32 to index
    %c3_31 = arith.constant 3 : index
    %47 = memref.load %arg2[%46, %c3_31] : memref<2x15xf32, #tpu.memory_space<smem>>
    %48 = vector.broadcast %47 : f32 to vector<16x16xf32>
    %49 = arith.mulf %48, %25 : vector<16x16xf32>
    %50 = arith.addf %45, %49 : vector<16x16xf32>
    %c0_32 = arith.constant 0 : index
    %c0_33 = arith.constant 0 : index
    %c0_34 = arith.constant 0 : index
    %c0_35 = arith.constant 0 : index
    %51 = vector.load %arg7[%c0_32, %c0_33, %c0_34, %c0_35] : memref<1x3x16x16xf32, #tpu.memory_space<vmem>>, vector<1x1x16x16xf32>
    %52 = vector.shape_cast %51 : vector<1x1x16x16xf32> to vector<16x16xf32>
    %53 = vector.shape_cast %50 : vector<16x16xf32> to vector<1x1x16x16xf32>
    tpu.vector_store %arg7[%c0_32, %c0_33, %c0_34, %c0_35], %53 {strides = array<i32>} : memref<1x3x16x16xf32, #tpu.memory_space<vmem>>, vector<1x1x16x16xf32>,
    %54 = vector.extract_strided_slice %17 {offsets = [16, 0], sizes = [16, 16], strides = [1, 1]} : vector<48x16xf32> to vector<16x16xf32>
    %55 = arith.index_cast %arg0 : i32 to index
    %c13 = arith.constant 13 : index
    %56 = memref.load %arg2[%55, %c13] : memref<2x15xf32, #tpu.memory_space<smem>>
    %57 = vector.broadcast %56 : f32 to vector<16x16xf32>
    %58 = arith.addf %54, %57 : vector<16x16xf32>
    %59 = arith.index_cast %arg0 : i32 to index
    %c4 = arith.constant 4 : index
    %60 = memref.load %arg2[%59, %c4] : memref<2x15xf32, #tpu.memory_space<smem>>
    %61 = vector.broadcast %60 : f32 to vector<16x16xf32>
    %62 = arith.mulf %61, %19 : vector<16x16xf32>
    %63 = arith.addf %58, %62 : vector<16x16xf32>
    %64 = arith.index_cast %arg0 : i32 to index
    %c5 = arith.constant 5 : index
    %65 = memref.load %arg2[%64, %c5] : memref<2x15xf32, #tpu.memory_space<smem>>
    %66 = vector.broadcast %65 : f32 to vector<16x16xf32>
    %67 = arith.mulf %66, %21 : vector<16x16xf32>
    %68 = arith.addf %63, %67 : vector<16x16xf32>
    %69 = arith.index_cast %arg0 : i32 to index
    %c6 = arith.constant 6 : index
    %70 = memref.load %arg2[%69, %c6] : memref<2x15xf32, #tpu.memory_space<smem>>
    %71 = vector.broadcast %70 : f32 to vector<16x16xf32>
    %72 = arith.mulf %71, %23 : vector<16x16xf32>
    %73 = arith.addf %68, %72 : vector<16x16xf32>
    %74 = arith.index_cast %arg0 : i32 to index
    %c7 = arith.constant 7 : index
    %75 = memref.load %arg2[%74, %c7] : memref<2x15xf32, #tpu.memory_space<smem>>
    %76 = vector.broadcast %75 : f32 to vector<16x16xf32>
    %77 = arith.mulf %76, %25 : vector<16x16xf32>
    %78 = arith.addf %73, %77 : vector<16x16xf32>
    %c0_36 = arith.constant 0 : index
    %c1_37 = arith.constant 1 : index
    %c0_38 = arith.constant 0 : index
    %c0_39 = arith.constant 0 : index
    %79 = vector.load %arg7[%c0_36, %c1_37, %c0_38, %c0_39] : memref<1x3x16x16xf32, #tpu.memory_space<vmem>>, vector<1x1x16x16xf32>
    %80 = vector.shape_cast %79 : vector<1x1x16x16xf32> to vector<16x16xf32>
    %81 = vector.shape_cast %78 : vector<16x16xf32> to vector<1x1x16x16xf32>
    tpu.vector_store %arg7[%c0_36, %c1_37, %c0_38, %c0_39], %81 {strides = array<i32>} : memref<1x3x16x16xf32, #tpu.memory_space<vmem>>, vector<1x1x16x16xf32>,
    %82 = vector.extract_strided_slice %17 {offsets = [32, 0], sizes = [16, 16], strides = [1, 1]} : vector<48x16xf32> to vector<16x16xf32>
    %83 = arith.index_cast %arg0 : i32 to index
    %c14 = arith.constant 14 : index
    %84 = memref.load %arg2[%83, %c14] : memref<2x15xf32, #tpu.memory_space<smem>>
    %85 = vector.broadcast %84 : f32 to vector<16x16xf32>
    %86 = arith.addf %82, %85 : vector<16x16xf32>
    %87 = arith.index_cast %arg0 : i32 to index
    %c8 = arith.constant 8 : index
    %88 = memref.load %arg2[%87, %c8] : memref<2x15xf32, #tpu.memory_space<smem>>
    %89 = vector.broadcast %88 : f32 to vector<16x16xf32>
    %90 = arith.mulf %89, %19 : vector<16x16xf32>
    %91 = arith.addf %86, %90 : vector<16x16xf32>
    %92 = arith.index_cast %arg0 : i32 to index
    %c9 = arith.constant 9 : index
    %93 = memref.load %arg2[%92, %c9] : memref<2x15xf32, #tpu.memory_space<smem>>
    %94 = vector.broadcast %93 : f32 to vector<16x16xf32>
    %95 = arith.mulf %94, %21 : vector<16x16xf32>
    %96 = arith.addf %91, %95 : vector<16x16xf32>
    %97 = arith.index_cast %arg0 : i32 to index
    %c10 = arith.constant 10 : index
    %98 = memref.load %arg2[%97, %c10] : memref<2x15xf32, #tpu.memory_space<smem>>
    %99 = vector.broadcast %98 : f32 to vector<16x16xf32>
    %100 = arith.mulf %99, %23 : vector<16x16xf32>
    %101 = arith.addf %96, %100 : vector<16x16xf32>
    %102 = arith.index_cast %arg0 : i32 to index
    %c11 = arith.constant 11 : index
    %103 = memref.load %arg2[%102, %c11] : memref<2x15xf32, #tpu.memory_space<smem>>
    %104 = vector.broadcast %103 : f32 to vector<16x16xf32>
    %105 = arith.mulf %104, %25 : vector<16x16xf32>
    %106 = arith.addf %101, %105 : vector<16x16xf32>
    %c0_40 = arith.constant 0 : index
    %c2_41 = arith.constant 2 : index
    %c0_42 = arith.constant 0 : index
    %c0_43 = arith.constant 0 : index
    %107 = vector.load %arg7[%c0_40, %c2_41, %c0_42, %c0_43] : memref<1x3x16x16xf32, #tpu.memory_space<vmem>>, vector<1x1x16x16xf32>
    %108 = vector.shape_cast %107 : vector<1x1x16x16xf32> to vector<16x16xf32>
    %109 = vector.shape_cast %106 : vector<16x16xf32> to vector<1x1x16x16xf32>
    tpu.vector_store %arg7[%c0_40, %c2_41, %c0_42, %c0_43], %109 {strides = array<i32>} : memref<1x3x16x16xf32, #tpu.memory_space<vmem>>, vector<1x1x16x16xf32>,
    return
  }
  func.func @transform_0(%arg0: i32, %arg1: i32, %arg2: memref<2x15xf32, #tpu.memory_space<smem>>) -> (i32, i32) {
    %c0_i32 = arith.constant 0 : i32
    %c0_i32_0 = arith.constant 0 : i32
    %c0_i32_1 = arith.constant 0 : i32
    return %c0_i32, %c0_i32_0 : i32, i32
  }
  func.func @transform_1(%arg0: i32, %arg1: i32, %arg2: memref<2x15xf32, #tpu.memory_space<smem>>) -> (i32, i32) {
    %c0_i32 = arith.constant 0 : i32
    %c0_i32_0 = arith.constant 0 : i32
    %c0_i32_1 = arith.constant 0 : i32
    return %c0_i32, %c0_i32_0 : i32, i32
  }
  func.func @transform_2(%arg0: i32, %arg1: i32, %arg2: memref<2x15xf32, #tpu.memory_space<smem>>) -> (i32, i32, i32, i32) {
    %c0_i32 = arith.constant 0 : i32
    %c0_i32_0 = arith.constant 0 : i32
    %c0_i32_1 = arith.constant 0 : i32
    return %arg0, %c0_i32, %arg1, %c0_i32_0 : i32, i32, i32, i32
  }
  func.func @transform_3(%arg0: i32, %arg1: i32, %arg2: memref<2x15xf32, #tpu.memory_space<smem>>) -> (i32, i32, i32, i32) {
    %c0_i32 = arith.constant 0 : i32
    %c0_i32_0 = arith.constant 0 : i32
    %c0_i32_1 = arith.constant 0 : i32
    %c0_i32_2 = arith.constant 0 : i32
    return %arg0, %c0_i32, %c0_i32_0, %c0_i32_1 : i32, i32, i32, i32
  }
  func.func @transform_4(%arg0: i32, %arg1: i32, %arg2: memref<2x15xf32, #tpu.memory_space<smem>>) -> (i32, i32, i32, i32) {
    %c0_i32 = arith.constant 0 : i32
    %c0_i32_0 = arith.constant 0 : i32
    %c0_i32_1 = arith.constant 0 : i32
    return %arg0, %c0_i32, %arg1, %c0_i32_0 : i32, i32, i32, i32
  }
}

</mosaic_0001>

<bundles_post_ra>
// kernel: _lambda_.1
= control target key start
LH: loop header
LB: loop body
LE: loop exit
PB: predicated region body
PF: predicated region fallthrough
CT: control target
= control target key end

     0   :  { %s921_s21 = smov [#allocation3]   ;;  %s1213_s0 = inlined_call_operand.vmem [shape: f32[2,15], index: 0, kind: input, shape index: {}]   ;;  %s1214_s1 = inlined_call_operand.vmem [shape: f32[16,10], index: 1, kind: input, shape index: {}]   ;;  %s1215_s2 = inlined_call_operand.hbm [shape: f32[8,16], index: 2, kind: input, shape index: {}]   ;;  %s1216_s3 = inlined_call_operand.vmem [shape: f32[2,4,16,16], index: 3, kind: input, shape index: {}]   ;;  %s1217_s4 = inlined_call_operand.vmem [shape: f32[2,3,10,8], index: 4, kind: input, shape index: {}]   ;;  %s1218_s5 = inlined_call_operand.hbm [shape: f32[2,3,16,16], index: 5, kind: output, shape index: {}]  }
   0x1   :  { %s11_s20 = sshll.u32 %s1213_s0, 4  ;;  %s12_s20 = int_to_ptr.vmem [resolvable:$true] %s11_s20 }
   0x2   :  { %14 = dma.vmem_to_smem %s12_s20, 32, %s921_s21, [#allocation2] }
   0x3   :  { %887 = dma.done.wait [#allocation2], 32 }
   0x4   :  { %888 = vsyncadd [#allocation2], 4294967264 }
   0x5   :  { %17 = sfence }
   0x6   :  { %18 = vsyncpa [#allocation5], 0 }
   0x7   :  { %19 = vsyncpa [#allocation6], 0 }
   0x8   :  { %21 = vsyncpa [#allocation6 + $0x1], 0  ;;  %s958_s22 = smov 0   ;;  %s960_s23 = smov 0  }
   0x9   :  { %s962_s24 = smov 0   ;;  %s964_s25 = smov 0  }
   0xa   :  { %s966_s26 = smov 0   ;;  %s968_s0 = smov 0  }
   0xb LB: > { %s674_s27 = sadd.s32 4294967295, %s919_s0   ;;  %s675_s28 = sadd.s32 4294967294, %s919_s0   ;;  %s919_s0 = sphi %s968_s0, %s27_s0   ;;  %s915_s26 = sphi %s966_s26, %s1225_s26   ;;  %s911_s25 = sphi %s964_s25, %s1224_s25   ;;  %s907_s24 = sphi %s962_s24, %s1223_s24   ;;  %s903_s23 = sphi %s960_s23, %s1222_s23   ;;  %s899_s22 = sphi %s958_s22, %s1221_s22  }
   0xc   : > { %s39_s29 = sadd.s32 1, %s915_s26  ;;  %s144_s30 = sadd.s32 1, %s907_s24 }
   0xd   : > { %p41_p0 = scmp.ge.s32.totalorder %s39_s29, 2  ;;  %p154_p1 = scmp.ne.s32.totalorder %s907_s24, %s903_s23 }
   0xe   : > { %p155_p2 = scmp.eq.s32.totalorder %s674_s27, 1  ;;  %p160_p3 = scmp.ne.s32.totalorder %s903_s23, %s899_s22 }
   0xf   : > { %s1227_s29 = smov (%p41_p0, %s39_s29), 0  ;;  %p161_p5 = scmp.eq.s32.totalorder %s675_s28, 1 }
  0x10   : > { %p998_p4 = por %p155_p2, %p154_p1  ;;  %s139_s7 = ssub.s32 %s915_s26, %s1227_s29 }
  0x11   : > { %p676_p6 = scmp.ge.s32.totalorder %s919_s0, 1  ;;  %p142_p7 = scmp.eq.s32.totalorder %s139_s7, 0 }
  0x12   : > { %p1005_p8 = por %p161_p5, %p160_p3  ;;  %p168_p9 = scmp.lt.s32.totalorder %s919_s0, 3 }
  0x13   : > { %s1011_s9 = scalar_select %p142_p7, %s907_s24, %s144_s30  }
  0x14   : > { %p169_p10 = pnand %p676_p6, %p168_p9  ;;  %p738_p11 = scmp.eq.s32.totalorder %s674_s27, 0 }
  0x15   : > { %s183_s12 = sshll.u32 %s1215_s2, 4  ;;  %s922_s13 = smov [#allocation4]   ;;  %s184_s12 = int_to_ptr.hbm [resolvable:$true] %s183_s12 }
  0x16   : > { %p730_p12 = pneg %p169_p10  ;;  %s185_s14 = sshll.u32 %s922_s13, 4  ;;  %s186_s14 = int_to_ptr.vmem [resolvable:$true] %s185_s14 }
  0x17   : > { %219 = sbr.rel (%p169_p10) target bundleno = 344 (0x158), region = 36 }
  0x18   : > { %p731_p13 = pnand %p738_p11, %p730_p12 }
  0x1a   : > { %733 = dma.hbm_to_vmem [thread:$0]  (!%p731_p13), %s184_s12, 128, %s186_s14, [#allocation5]  }
  0x1c   : > { %890 = dma.done.wait (%p738_p11), [#allocation5], 128  }
  0x1d   : > { %892 = vsyncadd (%p738_p11), [#allocation5], 4294967168  ;;  %p256_p0 = scmp.lt.s32.totalorder %s911_s25, 1  ;;  %vm284_vm0 = vcmask 1041408   ;;  %v272_v2 = vld [vmem:[%s1214_s1] sm:$0xff]  ;;  %vm277_vm1 = vcmask 80896  }
  0x1e   : > { %v273_v3 = vld [vmem:[%s1214_s1 + $0x8] sm:$0xff]  ;;  %v371_v8 = vld [vmem:[#allocation4] sm:$0xff]  ;;  %vm372_vm2 = vcmask 64512   ;;  %s1041_s30 = sshll.u32 %s911_s25, 7  ;;  %vm470_vm3 = vcmask 130048  }
  0x1f   : > { %s1018_s15 = scalar_select %p256_p0, %s911_s25, 1  ;;  %720 = vmatpush.msra.mxu3 %v371_v8 }
  0x20   : > { %s438_s7 = sadd.s32 12, %s1041_s30  ;;  %s449_s10 = sadd.s32 1, %s1041_s30 }
  0x21   : > { %s722_s16 = smul.u32 48, %s1018_s15  ;;  %s1046_s11 = sld [smem:[#allocation3 + %s1041_s30]] }
  0x22   : > { %s1048_s12 = sld [smem:[#allocation3 + %s438_s7]]  ;;  %s456_s13 = sadd.s32 2, %s1041_s30 }
  0x23   : > { %s269_s19 = scalar_lea.vmem %s1217_s4, %s722_s16  ;;  %s1051_s14 = sld [smem:[#allocation3 + %s449_s10]] }
  0x24   : > { %v276_v0 = vld [vmem:[%s269_s19 + $0x8] sm:$0x3]  ;;  %v275_v1 = vld [vmem:[%s269_s19] sm:$0xff]  ;;  %v688_v4 = vld [vmem:[%s269_s19 + $0x18] sm:$0x3]  ;;  %s463_s16 = sadd.s32 3, %s1041_s30 }
  0x25   : > { %684 = vmatpush.msk.msra.mxu0 %vm284_vm0, %v276_v0  ;;  %718 = vmatpush.msk.msra.mxu1 %vm284_vm0, %v276_v0  ;;  %v693_v5 = vld [vmem:[%s269_s19 + $0x28] sm:$0x3]  ;;  %v687_v6 = vld [vmem:[%s269_s19 + $0x10] sm:$0xff]  ;;  %v692_v7 = vld [vmem:[%s269_s19 + $0x20] sm:$0xff]  ;;  %s717_s17 = sshll.u32 %s1018_s15, 6  ;;  %s1055_s18 = sld [smem:[#allocation3 + %s456_s13]] }
  0x26   : > { %694 = vmatpush.msk.msra.mxu2 %vm284_vm0, %v693_v5  ;;  %s1057_s19 = sld [smem:[#allocation3 + %s463_s16]]  ;;  %s1062_s27 = scalar_lea.vmem %s1216_s3, %s717_s17 }
  0x27   : > { %303 = vmatpush.msra.mxu0 %v275_v1  ;;  %719 = vmatpush.msra.mxu1 %v275_v1  ;;  %v1065_v15 = vld [vmem:[%s1062_s27] sm:$0xff]  ;;  %v444_v16 = vstv %s1046_s11  ;;  %s478_s15 = sadd.s32 4, %s1041_s30  ;;  %v1071_v19 = vld [vmem:[%s1062_s27 + $0x10] sm:$0xff]  ;;  %s473_s28 = sadd.s32 13, %s1041_s30  ;;  %v1094_v30 = vld [vmem:[%s1062_s27 + $0x8] sm:$0xff] }
  0x28   : > { %685 = vmatmul.msk.f32.vlgmr.msra.gmra.mxu0 %vm277_vm1, %v272_v2  ;;  %686 = vmatmul.msk.f32.vlgmr.msra.gmra.mxu1 %vm277_vm1, %v273_v3  ;;  %v445_v17 = vmul.f32 %v444_v16, %v1065_v15  ;;  %v440_v20 = vstv %s1048_s12  ;;  %s485_s7 = sadd.s32 5, %s1041_s30  ;;  %s252_s10 = sand.u32 1, %s903_s23   ;;  %v1080_v24 = vld [vmem:[%s1062_s27 + $0x20] sm:$0xff]  ;;  %v1090_v28 = vld [vmem:[%s1062_s27 + $0x30] sm:$0xff]  ;;  %v1103_v33 = vld [vmem:[%s1062_s27 + $0x18] sm:$0xff]  ;;  %v446_v35 = vmul.f32 %v444_v16, %v1094_v30 }
  0x29   : > { %689 = vmatpush.msk.msrb.mxu1 %vm284_vm0, %v688_v4  ;;  %363 = vmatpush.msra.mxu2 %v692_v7  ;;  %v451_v21 = vstv %s1051_s14  ;;  %s1083_s11 = sld [smem:[#allocation3 + %s478_s15]]  ;;  %s492_s13 = sadd.s32 6, %s1041_s30  ;;  %v1109_v37 = vld [vmem:[%s1062_s27 + $0x28] sm:$0xff]  ;;  %v1115_v41 = vld [vmem:[%s1062_s27 + $0x38] sm:$0xff] }
  0x2a   : > { %695 = vmatmul.msk.f32.vlgmr.msra.gmra.mxu2 %vm277_vm1, %v272_v2  ;;  %406 = vmatpush.msrb.mxu0 %v371_v8  ;;  %v452_v23 = vmul.f32 %v1071_v19, %v451_v21  ;;  %s1086_s12 = sld [smem:[#allocation3 + %s473_s28]]  ;;  %s499_s16 = sadd.s32 7, %s1041_s30  ;;  %v453_v40 = vmul.f32 %v1103_v33, %v451_v21 }
  0x2b   : > { %333 = vmatpush.msrb.mxu1 %v687_v6  ;;  %v458_v25 = vstv %s1055_s18  ;;  %s1096_s14 = sld [smem:[#allocation3 + %s485_s7]]  ;;  %s721_s17 = smul.u32 48, %s252_s10 }
  0x2c   : > { %v459_v27 = vmul.f32 %v1080_v24, %v458_v25  ;;  %v465_v29 = vstv %s1057_s19  ;;  %s1105_s18 = sld [smem:[#allocation3 + %s492_s13]]  ;;  %v460_v44 = vmul.f32 %v1109_v37, %v458_v25  ;;  %s514_s21 = sadd.s32 8, %s1041_s30 }
  0x2d   : > { %v466_v32 = vmul.f32 %v1090_v28, %v465_v29  ;;  %s1111_s19 = sld [smem:[#allocation3 + %s499_s16]]  ;;  %s1118_s20 = scalar_lea.vmem [#allocation7], %s721_s17  ;;  %v467_v48 = vmul.f32 %v1115_v41, %v465_v29 }
  0x2e   : > { %s509_s27 = sadd.s32 14, %s1041_s30  ;;  %s521_s15 = sadd.s32 9, %s1041_s30 }
  0x2f   : > { %v480_v42 = vstv %s1083_s11  ;;  %s1134_s28 = sld [smem:[#allocation3 + %s514_s21]]  ;;  %s528_s11 = sadd.s32 10, %s1041_s30 }
  0x30   : > { %690 = vmatmul.msk.f32.vlgmr.msrb.gmra.mxu1 %vm277_vm1, %v272_v2  ;;  %v475_v45 = vstv %s1086_s12  ;;  %v481_v49 = vmul.f32 %v480_v42, %v1065_v15  ;;  %s1139_s7 = sld [smem:[#allocation3 + %s509_s27]]  ;;  %v482_v62 = vmul.f32 %v480_v42, %v1094_v30  ;;  %s535_s13 = sadd.s32 11, %s1041_s30 }
  0x31   : > { %v487_v46 = vstv %s1096_s14  ;;  %s1142_s12 = sld [smem:[#allocation3 + %s521_s15]]  ;;  %s723_s30 = smul.u32 48, %s911_s25 }
  0x32   : > { %696 = vmatmul.msk.f32.gmra.mxu2 %vm277_vm1, %v273_v3  ;;  %v494_v51 = vstv %s1105_s18  ;;  %v488_v54 = vmul.f32 %v1071_v19, %v487_v46  ;;  %s1146_s14 = sld [smem:[#allocation3 + %s528_s11]]  ;;  %v489_v2 = vmul.f32 %v1103_v33, %v487_v46  ;;  %s560_s25 = sshll.u32 %s1118_s20, 4  ;;  %s561_s25 = int_to_ptr.vmem [resolvable:$true] %s560_s25 }
  0x33   : > { %v501_v55 = vstv %s1111_s19  ;;  %v495_v58 = vmul.f32 %v1080_v24, %v494_v51  ;;  %s1149_s16 = sld [smem:[#allocation3 + %s535_s13]]  ;;  %v496_v4 = vmul.f32 %v1109_v37, %v494_v51  ;;  %s559_s19 = scalar_lea.hbm %s1218_s5, %s723_s30 }
  0x34   : > { %v502_v60 = vmul.f32 %v1090_v28, %v501_v55  ;;  %v503_v7 = vmul.f32 %v1115_v41, %v501_v55  ;;  %s562_s21 = sshll.u32 %s559_s19, 4  ;;  %s546_s27 = scalar_lea.sflag [#allocation6], %s252_s10  ;;  %s563_s21 = int_to_ptr.hbm [resolvable:$true] %s562_s21 }
  0x35   : > { %v516_v5 = vstv %s1134_s28  ;;  %s849_s15 = sshra.s32 %s563_s21, 4  ;;  %s850_s15 = int_to_ptr.hbm [resolvable:$true] %s849_s15 }
  0x36   : > { %v511_v8 = vstv %s1139_s7  ;;  %s851_s28 = scalar_lea.hbm %s850_s15, 48  ;;  %p856_p5 = scmp.lt.s32.totalorder %s850_s15, %s1218_s5 }
  0x37   : > { %p852_p1 = scmp.ne.s32.totalorder %s850_s15, %s851_s28 }
  0x38   : > { %691 = vmatmul.msk.f32.gmra.mxu1 %vm277_vm1, %v273_v3 }
  0x39   : > { %p853_p2 = pnand %p852_p1, %p998_p4 }
  0x3b   : > { %p854_p3 = pneg %p853_p2 }
  0xa5   : > { %v305_v9 = vpop.f32.mrf.mxu0  ;;  %v308_v10 = vpop.f32.mrf.mxu1 }
  0xa6   : > { %697 = vmatmul.msk.f32.vlgmr.msrb.gmra.mxu0 %vm372_vm2, %v305_v9  ;;  %v523_v9 = vstv %s1142_s12  ;;  %s855_s12 = scalar_lea.hbm %s1218_s5, 96 }
  0xa7   : > { %p857_p6 = scmp.lt.s32.totalorder %s855_s12, %s851_s28 }
  0xa9   : > { %p858_p7 = por %p857_p6, %p856_p5 }
  0xab   : > { %p859_p9 = pnand %p858_p7, %p854_p3 }
  0xad   : > { %v335_v11 = vpop.f32.mrf.mxu1  ;;  %v365_v13 = vpop.f32.mrf.mxu2 }
  0xae   : > { %698 = vmatmul.msk.f32.gmra.mxu0 %vm372_vm2, %v308_v10  ;;  %699 = vmatmul.msk.f32.vlgmr.msra.gmra.mxu3 %vm372_vm2, %v335_v11  ;;  %v517_v11 = vmul.f32 %v516_v5, %v1065_v15  ;;  %v518_v15 = vmul.f32 %v516_v5, %v1094_v30 }
  0xb5   : > { %v338_v12 = vpop.f32.mrf.mxu1  ;;  %v368_v14 = vpop.f32.mrf.mxu2 }
  0xb6   : > { %700 = vmatmul.msk.f32.gmra.mxu3 %vm372_vm2, %v338_v12 }
  0xbe   : > { %701 = vmatmul.msk.f32.gmra.mxu3 %vm372_vm2, %v365_v13  ;;  %v530_v13 = vstv %s1146_s14 }
  0xbf   : > { %v531_v21 = vmul.f32 %v1080_v24, %v530_v13 }
  0xc6   : > { %702 = vmatmul.msk.f32.gmra.mxu3 %vm372_vm2, %v368_v14 }
 0x123   : > { %v408_v18 = vpop.f32.mrf.mxu0 }
 0x124   : > { %v441_v22 = vadd.f32 %v440_v20, %v408_v18  ;;  %v537_v18 = vstv %s1149_s16 }
 0x125   : > { %v539_v30 = vmul.f32 %v1115_v41, %v537_v18 }
 0x126   : > { %v447_v26 = vadd.f32 %v445_v17, %v441_v22  ;;  %v524_v17 = vmul.f32 %v1071_v19, %v523_v9  ;;  %v525_v19 = vmul.f32 %v1103_v33, %v523_v9 }
 0x128   : > { %v454_v31 = vadd.f32 %v452_v23, %v447_v26  ;;  %v538_v23 = vmul.f32 %v1090_v28, %v537_v18  ;;  %v532_v28 = vmul.f32 %v1109_v37, %v530_v13 }
 0x12a   : > { %v461_v34 = vadd.f32 %v459_v27, %v454_v31 }
 0x12b   : > { %v411_v36 = vpop.f32.mrf.mxu0 }
 0x12c   : > { %v468_v38 = vadd.f32 %v466_v32, %v461_v34  ;;  %v442_v39 = vadd.f32 %v440_v20, %v411_v36 }
 0x12e   : > { %471 = vst.msk [vmem:[%s1118_s20] sm:$0xff] %vm470_vm3, %v468_v38  ;;  %v448_v43 = vadd.f32 %v446_v35, %v442_v39 }
 0x130   : > { %v455_v47 = vadd.f32 %v453_v40, %v448_v43 }
 0x131   : > { %v414_v50 = vpop.f32.mrf.mxu3 }
 0x132   : > { %v462_v52 = vadd.f32 %v460_v44, %v455_v47  ;;  %v476_v53 = vadd.f32 %v475_v45, %v414_v50 }
 0x134   : > { %v469_v56 = vadd.f32 %v467_v48, %v462_v52  ;;  %v483_v57 = vadd.f32 %v481_v49, %v476_v53 }
 0x136   : > { %472 = vst.msk [vmem:[%s1118_s20 + $0x8] sm:$0xff] %vm470_vm3, %v469_v56  ;;  %v490_v59 = vadd.f32 %v488_v54, %v483_v57 }
 0x138   : > { %v497_v61 = vadd.f32 %v495_v58, %v490_v59 }
 0x139   : > { %v417_v63 = vpop.f32.mrf.mxu3 }
 0x13a   : > { %v504_v0 = vadd.f32 %v502_v60, %v497_v61  ;;  %v477_v1 = vadd.f32 %v475_v45, %v417_v63 }
 0x13c   : > { %710 = vst.msk [vmem:[%s1118_s20 + $0x10] sm:$0xff] %vm470_vm3, %v504_v0  ;;  %v484_v3 = vadd.f32 %v482_v62, %v477_v1 }
 0x13e   : > { %v491_v6 = vadd.f32 %v489_v2, %v484_v3 }
 0x140   : > { %v498_v10 = vadd.f32 %v496_v4, %v491_v6 }
 0x141   : > { %v420_v12 = vpop.f32.mrf.mxu3 }
 0x142   : > { %v505_v14 = vadd.f32 %v503_v7, %v498_v10  ;;  %v512_v16 = vadd.f32 %v511_v8, %v420_v12 }
 0x144   : > { %711 = vst.msk [vmem:[%s1118_s20 + $0x18] sm:$0xff] %vm470_vm3, %v505_v14  ;;  %v519_v20 = vadd.f32 %v517_v11, %v512_v16 }
 0x146   : > { %v526_v22 = vadd.f32 %v524_v17, %v519_v20 }
 0x148   : > { %v533_v25 = vadd.f32 %v531_v21, %v526_v22 }
 0x149   : > { %v423_v26 = vpop.f32.mrf.mxu3 }
 0x14a   : > { %v540_v27 = vadd.f32 %v538_v23, %v533_v25  ;;  %v513_v29 = vadd.f32 %v511_v8, %v423_v26 }
 0x14c   : > { %712 = vst.msk [vmem:[%s1118_s20 + $0x20] sm:$0xff] %vm470_vm3, %v540_v27  ;;  %v520_v24 = vadd.f32 %v518_v15, %v513_v29 }
 0x14e   : > { %v527_v31 = vadd.f32 %v525_v19, %v520_v24 }
 0x150   : > { %v534_v32 = vadd.f32 %v532_v28, %v527_v31 }
 0x152   : > { %v541_v34 = vadd.f32 %v539_v30, %v534_v32 }
 0x154   : > { %713 = vst.msk [vmem:[%s1118_s20 + $0x28] sm:$0xff] %vm470_vm3, %v541_v34 }
 0x155   : > { %862 = shalt.err (!%p859_p9)
}
 0x156   : > { %s923_s10 = smov 128   ;;  %s924_s20 = smov 8  }
 0x157   : > { %728 = dma.vmem_to_hbm [thread:$0]  (%p998_p4), %s561_s25, 768, %s563_s21, %s546_s27, %s923_s10, %s923_s10, %s924_s20  }
 0x158 PF: > { %p740_p10 = scmp.ge.s32.totalorder %s919_s0, 2  ;;  %s577_s16 = sand.u32 1, %s899_s22  }
 0x159   : > { %s578_s30 = scalar_lea.sflag [#allocation6], %s577_s16 }
 0x15a   : > { %p735_p11 = pnand %p740_p10, %p1005_p8 }
 0x15c   : > { %p736_p12 = pneg %p735_p11 }
 0x15e   : > { %894 = dma.done.wait (%p736_p12), %s578_s30, 768  }
 0x15f   : > { %896 = vsyncadd (%p736_p12), %s578_s30, 4294966528  ;;  %s27_s0 = sadd.s32 1, %s919_s0   ;;  %s1221_s22 = smov %s903_s23 }
 0x160   : > { %p24_p13 = scmp.ge.s32.totalorder %s27_s0, 4   ;;  %s1222_s23 = smov %s907_s24 }
 0x161   : > { %s1223_s24 = smov %s1011_s9  ;;  %s1224_s25 = smov %s915_s26 }
 0x162   : > { %s1225_s26 = smov %s1227_s29  ;;  %26 = sbr.rel (!%p24_p13) target bundleno = 11 (0xb), region = 87 }
 0x167   :  { %584 = vsyncpa [#allocation5], 1 }
 0x168   :  { %586 = vsyncpa [#allocation5 + $0x1], 1 }
 0x169   :  { %587 = vsyncpa [#allocation6], 1 }
 0x16a   :  { %589 = vsyncpa [#allocation6 + $0x1], 1 }

</bundles_post_ra>
